<compile_context>
chip_gen: v5e
topology: v5e:2x2
jax: 0.10.0
libtpu: 0.0.40
codegen_flags: <defaults>
</compile_context>

<pallas_src>
import functools
import math

import jax
import jax.numpy as jnp
from jax import lax
from jax.experimental import pallas as pl
from jax.experimental.pallas import tpu as pltpu

EPS_BN = 1e-5     # torch.nn.BatchNorm1d default eps
EPS_NORM = 1e-12  # torch.nn.functional.normalize default eps


def _simple_mlp_kernel(x_ref, g1_ref, be1_ref, w1_ref, b1_ref,
                       g2_ref, be2_ref, w2_ref, b2_ref, o_ref,
                       sum_ref, sumsq_ref, pooled_ref,
                       *, n_valid, tn, seq_len):
    """Grid axis 0 tiles the (padded) batch; statistics stream into scratch."""
    i = pl.program_id(0)
    nsteps = pl.num_programs(0)

    @pl.when(i == 0)
    def _init():
        sum_ref[...] = jnp.zeros_like(sum_ref)
        sumsq_ref[...] = jnp.zeros_like(sumsq_ref)

    # ---- streaming pass over this (tn, T, C) tile of raw x --------------------
    x = x_ref[...].astype(jnp.float32)                       # (tn, T, C)
    _, T, C = x.shape
    x2d = x.reshape(tn * T, C)
    sum_ref[...] += jnp.sum(x2d, axis=0, keepdims=True)       # per-channel sum
    sumsq_ref[...] += jnp.sum(x2d * x2d, axis=0, keepdims=True)
    row0 = pl.multiple_of(i * tn, tn)
    # per-sample mean over T of raw x (BN1 affine applied later, post-pool)
    pooled_ref[pl.ds(row0, tn), :] = jnp.sum(x, axis=1) * (1.0 / T)

    # ---- finalize: tiny post-pool MLP on the last grid step --------------------
    @pl.when(i == nsteps - 1)
    def _finalize():
        inv_count = 1.0 / float(n_valid * seq_len)            # padded rows are 0
        mu = sum_ref[...] * inv_count                          # (1, C)
        var = jnp.maximum(sumsq_ref[...] * inv_count - mu * mu, 0.0)  # biased var
        # NOTE: one-pass variance accumulated in f32; fine for normalized inputs.
        scale1 = lax.rsqrt(var + EPS_BN) * g1_ref[...]
        pooled_bn = (pooled_ref[...] - mu) * scale1 + be1_ref[...]     # (Np, C)

        # Linear(dim, dim)
        h = jnp.dot(pooled_bn, w1_ref[...],
                    preferred_element_type=jnp.float32) + b1_ref[...]  # (Np, C)

        # BatchNorm1d over the batch axis — exclude padded rows from stats.
        n_pad = h.shape[0]
        row_ids = lax.broadcasted_iota(jnp.int32, (n_pad, 1), 0)
        mask = (row_ids < n_valid).astype(jnp.float32)
        hm = h * mask
        inv_n = 1.0 / float(n_valid)
        mu2 = jnp.sum(hm, axis=0, keepdims=True) * inv_n
        var2 = jnp.maximum(
            jnp.sum(hm * hm, axis=0, keepdims=True) * inv_n - mu2 * mu2, 0.0)
        scale2 = lax.rsqrt(var2 + EPS_BN) * g2_ref[...]
        h = (h - mu2) * scale2 + be2_ref[...]

        # ReLU
        h = jnp.maximum(h, 0.0)

        # Linear(dim, output_dim)  (output width zero-padded to 128 lanes)
        o = jnp.dot(h, w2_ref[...],
                    preferred_element_type=jnp.float32) + b2_ref[...]  # (Np, Op)

        # F.normalize(p=2, dim=1): x / max(||x||, eps)  (padded cols are zero)
        nsq = jnp.sum(o * o, axis=1, keepdims=True)
        o_ref[...] = (o * lax.rsqrt(jnp.maximum(nsq, EPS_NORM * EPS_NORM))
                      ).astype(o_ref.dtype)


def simple_mlp_forward(x, params, *, target_tile_bytes=4 * 1024 * 1024):
    """x: (N, T, C) = (batch, time, channel) — the layout before torch's rearrange."""
    N, T, C = x.shape
    out_dim = params["w2"].shape[1]
    out_pad = ((out_dim + 127) // 128) * 128

    # Lane-dense output: zero-pad the second linear layer; exact because padded
    # columns produce zeros and don't contribute to the L2 norm.
    w2, b2 = params["w2"], params["b2"]
    if out_pad != out_dim:
        w2 = jnp.pad(w2, ((0, 0), (0, out_pad - out_dim)))
        b2 = jnp.pad(b2, ((0, 0), (0, out_pad - out_dim)))

    # Batch tile size: biggest 8-row-aligned tile under the target tile bytes.
    itemsize = x.dtype.itemsize
    bytes_per_row = T * C * itemsize
    tn = max(8, (int(target_tile_bytes) // bytes_per_row) // 8 * 8)
    tn = min(tn, ((N + 7) // 8) * 8)
    n_pad = pl.cdiv(N, tn) * tn
    if n_pad != N:
        # Zero rows contribute nothing to the channel sums; BN stats divide by
        # the true count and padded rows are masked out of BN2 / sliced off.
        x = jnp.pad(x, ((0, n_pad - N), (0, 0), (0, 0)))
    grid = n_pad // tn

    kernel = functools.partial(_simple_mlp_kernel, n_valid=N, tn=tn, seq_len=T)

    # VMEM budget: double-buffered input tile + params + scratch + output, with
    # headroom, clamped so it stays inside v7x's 64 MiB physical VMEM.
    c_pad = ((C + 127) // 128) * 128
    est = (2 * tn * T * C * itemsize
           + (C * c_pad + C * out_pad + 8 * c_pad) * 4
           + (n_pad * c_pad + 2 * 8 * c_pad) * 4
           + 2 * n_pad * out_pad * 4)
    vmem_limit = int(min(max(est + (8 << 20), 16 << 20), 48 << 20))

    flops = 4 * n_pad * T * C + 2 * n_pad * C * C + 2 * n_pad * C * out_pad
    bytes_accessed = (n_pad * T * C * itemsize
                      + (C * C + C * out_pad + 6 * C) * 4
                      + n_pad * out_pad * 4)

    out = pl.pallas_call(
        kernel,
        out_shape=jax.ShapeDtypeStruct((n_pad, out_pad), jnp.float32),
        grid_spec=pltpu.PrefetchScalarGridSpec(
            num_scalar_prefetch=0,
            grid=(grid,),
            in_specs=[
                pl.BlockSpec((tn, T, C), lambda i: (i, 0, 0)),      # x tile
                pl.BlockSpec((1, C), lambda i: (0, 0)),             # g1
                pl.BlockSpec((1, C), lambda i: (0, 0)),             # be1
                pl.BlockSpec((C, C), lambda i: (0, 0)),             # w1
                pl.BlockSpec((1, C), lambda i: (0, 0)),             # b1
                pl.BlockSpec((1, C), lambda i: (0, 0)),             # g2
                pl.BlockSpec((1, C), lambda i: (0, 0)),             # be2
                pl.BlockSpec((C, out_pad), lambda i: (0, 0)),       # w2 (padded)
                pl.BlockSpec((1, out_pad), lambda i: (0, 0)),       # b2 (padded)
            ],
            out_specs=pl.BlockSpec((n_pad, out_pad), lambda i: (0, 0)),
            scratch_shapes=[
                pltpu.VMEM((1, C), jnp.float32),       # per-channel sum
                pltpu.VMEM((1, C), jnp.float32),       # per-channel sum of squares
                pltpu.VMEM((n_pad, C), jnp.float32),   # per-sample mean over T
            ],
        ),
        compiler_params=pltpu.CompilerParams(
            dimension_semantics=("arbitrary",),        # batch-tile axis is a reduction
            vmem_limit_bytes=vmem_limit,
        ),
        cost_estimate=pl.CostEstimate(
            flops=flops,
            transcendentals=3 * C + n_pad,
            bytes_accessed=bytes_accessed,
        ),
    )(x, params["g1"], params["be1"], params["w1"], params["b1"],
      params["g2"], params["be2"], w2, b2)

    return out[:N, :out_dim]


def init_params(key, dim, output_dim):
    """Deterministic synthetic parameters (shapes match the torch module)."""
    ks = jax.random.split(key, 8)
    lim = 1.0 / math.sqrt(dim)
    return dict(
        # mlp[0]: Linear(dim, dim)  (stored as (in, out))
        w1=jax.random.uniform(ks[0], (dim, dim), jnp.float32, -lim, lim),
        b1=jax.random.uniform(ks[1], (1, dim), jnp.float32, -lim, lim),
        # mlp[3]: Linear(dim, output_dim)
        w2=jax.random.uniform(ks[2], (dim, output_dim), jnp.float32, -lim, lim),
        b2=jax.random.uniform(ks[3], (1, output_dim), jnp.float32, -lim, lim),
        # self.bn: BatchNorm1d(dim) affine params
        g1=jax.random.uniform(ks[4], (1, dim), jnp.float32, 0.5, 1.5),
        be1=jax.random.uniform(ks[5], (1, dim), jnp.float32, -0.5, 0.5),
        # mlp[1]: BatchNorm1d(dim) affine params
        g2=jax.random.uniform(ks[6], (1, dim), jnp.float32, 0.5, 1.5),
        be2=jax.random.uniform(ks[7], (1, dim), jnp.float32, -0.5, 0.5),
    )


def reference_forward(x, p):
    """Pure-JAX reference mirroring the torch forward (train-mode BN)."""
    N, T, C = x.shape
    x2 = x.reshape(N * T, C)
    mu = jnp.mean(x2, axis=0, keepdims=True)
    var = jnp.mean((x2 - mu) ** 2, axis=0, keepdims=True)
    xn = (x2 - mu) / jnp.sqrt(var + EPS_BN) * p["g1"] + p["be1"]
    pooled = jnp.mean(xn.reshape(N, T, C), axis=1)
    h = pooled @ p["w1"] + p["b1"]
    mu2 = jnp.mean(h, axis=0, keepdims=True)
    var2 = jnp.mean((h - mu2) ** 2, axis=0, keepdims=True)
    h = (h - mu2) / jnp.sqrt(var2 + EPS_BN) * p["g2"] + p["be2"]
    h = jnp.maximum(h, 0.0)
    o = h @ p["w2"] + p["b2"]
    nrm = jnp.sqrt(jnp.sum(o * o, axis=1, keepdims=True))
    return o / jnp.maximum(nrm, EPS_NORM)


if __name__ == "__main__":
    key = jax.random.PRNGKey(0)

    # Small canonical shape: batch=2, time=8, channels(dim)=32, out=16.
    N, T, dim, output_dim = 2, 8, 32, 16
    kx, kp, kx2 = jax.random.split(key, 3)
    x = jax.random.normal(kx, (N, T, dim), jnp.float32)
    params = init_params(kp, dim, output_dim)

    out = jax.block_until_ready(simple_mlp_forward(x, params))
    ref = reference_forward(x, params)
    assert out.shape == (N, output_dim)
    assert bool(jnp.allclose(out, ref, rtol=1e-4, atol=1e-5)), "mismatch vs reference"

    # Second run with a tiny tile budget to force a multi-step grid (exercises
    # streaming accumulation, batch padding and BN2 row masking).
    N2 = 20
    x2 = jax.random.normal(kx2, (N2, T, dim), jnp.float32)
    out2 = jax.block_until_ready(
        simple_mlp_forward(x2, params, target_tile_bytes=8 * 1024))
    ref2 = reference_forward(x2, params)
    assert out2.shape == (N2, output_dim)
    assert bool(jnp.allclose(out2, ref2, rtol=1e-4, atol=1e-5)), "tiled mismatch"

    print("KERNEL_OK")
</pallas_src>

<mosaic_0001>
module attributes {stable_mosaic.version = 11 : i64} {
  func.func @_simple_mlp_kernel(%arg0: i32, %arg1: memref<8x8x32xf32, #tpu.memory_space<vmem>>, %arg2: memref<1x32xf32, #tpu.memory_space<vmem>>, %arg3: memref<1x32xf32, #tpu.memory_space<vmem>>, %arg4: memref<32x32xf32, #tpu.memory_space<vmem>>, %arg5: memref<1x32xf32, #tpu.memory_space<vmem>>, %arg6: memref<1x32xf32, #tpu.memory_space<vmem>>, %arg7: memref<1x32xf32, #tpu.memory_space<vmem>>, %arg8: memref<32x128xf32, #tpu.memory_space<vmem>>, %arg9: memref<1x128xf32, #tpu.memory_space<vmem>>, %arg10: memref<8x128xf32, #tpu.memory_space<vmem>>, %arg11: memref<1x32xf32, #tpu.memory_space<vmem>>, %arg12: memref<1x32xf32, #tpu.memory_space<vmem>>, %arg13: memref<8x32xf32, #tpu.memory_space<vmem>>) attributes {dimension_semantics = [#tpu.dimension_semantics<arbitrary>], iteration_bounds = array<i64: 1>, scalar_prefetch = 0 : i64, scratch_operands = 3 : i64, tpu.core_type = #tpu.core_type<tc>, window_params = [{transform_indices = @transform_0, window_bounds = array<i64: 8, 8, 32>}, {pipeline_mode = #tpu.pipeline_mode<synchronous>, transform_indices = @transform_1, window_bounds = array<i64: 1, 32>}, {pipeline_mode = #tpu.pipeline_mode<synchronous>, transform_indices = @transform_2, window_bounds = array<i64: 1, 32>}, {pipeline_mode = #tpu.pipeline_mode<synchronous>, transform_indices = @transform_3, window_bounds = array<i64: 32, 32>}, {pipeline_mode = #tpu.pipeline_mode<synchronous>, transform_indices = @transform_4, window_bounds = array<i64: 1, 32>}, {pipeline_mode = #tpu.pipeline_mode<synchronous>, transform_indices = @transform_5, window_bounds = array<i64: 1, 32>}, {pipeline_mode = #tpu.pipeline_mode<synchronous>, transform_indices = @transform_6, window_bounds = array<i64: 1, 32>}, {pipeline_mode = #tpu.pipeline_mode<synchronous>, transform_indices = @transform_7, window_bounds = array<i64: 32, 128>}, {pipeline_mode = #tpu.pipeline_mode<synchronous>, transform_indices = @transform_8, window_bounds = array<i64: 1, 128>}, {pipeline_mode = #tpu.pipeline_mode<synchronous>, transform_indices = @transform_9, window_bounds = array<i64: 8, 128>}]} {
    %c0_i32 = arith.constant 0 : i32
    %0 = arith.cmpi eq, %arg0, %c0_i32 : i32
    %1 = arith.extui %0 : i1 to i32
    %c0_i32_0 = arith.constant 0 : i32
    %2 = arith.cmpi ne, %1, %c0_i32_0 : i32
    scf.if %2 {
      %cst_17 = arith.constant 0.000000e+00 : f32
      %26 = vector.broadcast %cst_17 : f32 to vector<1x32xf32>
      %c0_18 = arith.constant 0 : index
      %c0_19 = arith.constant 0 : index
      %27 = vector.load %arg11[%c0_18, %c0_19] : memref<1x32xf32, #tpu.memory_space<vmem>>, vector<1x32xf32>
      tpu.vector_store %arg11[%c0_18, %c0_19], %26 {strides = array<i32>} : memref<1x32xf32, #tpu.memory_space<vmem>>, vector<1x32xf32>,
      %cst_20 = arith.constant 0.000000e+00 : f32
      %28 = vector.broadcast %cst_20 : f32 to vector<1x32xf32>
      %c0_21 = arith.constant 0 : index
      %c0_22 = arith.constant 0 : index
      %29 = vector.load %arg12[%c0_21, %c0_22] : memref<1x32xf32, #tpu.memory_space<vmem>>, vector<1x32xf32>
      tpu.vector_store %arg12[%c0_21, %c0_22], %28 {strides = array<i32>} : memref<1x32xf32, #tpu.memory_space<vmem>>, vector<1x32xf32>,
    } else {
    }
    %c0 = arith.constant 0 : index
    %c0_1 = arith.constant 0 : index
    %c0_2 = arith.constant 0 : index
    %3 = vector.load %arg1[%c0, %c0_1, %c0_2] : memref<8x8x32xf32, #tpu.memory_space<vmem>>, vector<8x8x32xf32>
    %4 = vector.shape_cast %3 : vector<8x8x32xf32> to vector<64x32xf32>
    %c0_3 = arith.constant 0 : index
    %c0_4 = arith.constant 0 : index
    %5 = vector.load %arg11[%c0_3, %c0_4] : memref<1x32xf32, #tpu.memory_space<vmem>>, vector<1x32xf32>
    %cst = arith.constant dense<0.000000e+00> : vector<32xf32>
    %6 = vector.multi_reduction <add>, %4, %cst [0] : vector<64x32xf32> to vector<32xf32>
    %7 = vector.shape_cast %6 : vector<32xf32> to vector<1x32xf32>
    %8 = arith.addf %5, %7 : vector<1x32xf32>
    %c0_5 = arith.constant 0 : index
    %c0_6 = arith.constant 0 : index
    %9 = vector.load %arg11[%c0_5, %c0_6] : memref<1x32xf32, #tpu.memory_space<vmem>>, vector<1x32xf32>
    tpu.vector_store %arg11[%c0_5, %c0_6], %8 {strides = array<i32>} : memref<1x32xf32, #tpu.memory_space<vmem>>, vector<1x32xf32>,
    %c0_7 = arith.constant 0 : index
    %c0_8 = arith.constant 0 : index
    %10 = vector.load %arg12[%c0_7, %c0_8] : memref<1x32xf32, #tpu.memory_space<vmem>>, vector<1x32xf32>
    %11 = arith.mulf %4, %4 : vector<64x32xf32>
    %cst_9 = arith.constant dense<0.000000e+00> : vector<32xf32>
    %12 = vector.multi_reduction <add>, %11, %cst_9 [0] : vector<64x32xf32> to vector<32xf32>
    %13 = vector.shape_cast %12 : vector<32xf32> to vector<1x32xf32>
    %14 = arith.addf %10, %13 : vector<1x32xf32>
    %c0_10 = arith.constant 0 : index
    %c0_11 = arith.constant 0 : index
    %15 = vector.load %arg12[%c0_10, %c0_11] : memref<1x32xf32, #tpu.memory_space<vmem>>, vector<1x32xf32>
    tpu.vector_store %arg12[%c0_10, %c0_11], %14 {strides = array<i32>} : memref<1x32xf32, #tpu.memory_space<vmem>>, vector<1x32xf32>,
    %c8_i32 = arith.constant 8 : i32
    %16 = arith.muli %arg0, %c8_i32 : i32
    %17 = tpu.assume_multiple %16, 8 : i32
    %cst_12 = arith.constant dense<0.000000e+00> : vector<8x32xf32>
    %18 = vector.multi_reduction <add>, %3, %cst_12 [1] : vector<8x8x32xf32> to vector<8x32xf32>
    %cst_13 = arith.constant 1.250000e-01 : f32
    %19 = vector.broadcast %cst_13 : f32 to vector<8x32xf32>
    %20 = arith.mulf %18, %19 : vector<8x32xf32>
    %21 = arith.index_cast %17 : i32 to index
    %c0_14 = arith.constant 0 : index
    %22 = vector.load %arg13[%21, %c0_14] : memref<8x32xf32, #tpu.memory_space<vmem>>, vector<8x32xf32>
    tpu.vector_store %arg13[%21, %c0_14], %20 {strides = array<i32>} : memref<8x32xf32, #tpu.memory_space<vmem>>, vector<8x32xf32>,
    %c0_i32_15 = arith.constant 0 : i32
    %23 = arith.cmpi eq, %arg0, %c0_i32_15 : i32
    %24 = arith.extui %23 : i1 to i32
    %c0_i32_16 = arith.constant 0 : i32
    %25 = arith.cmpi ne, %24, %c0_i32_16 : i32
    scf.if %25 {
      %c0_17 = arith.constant 0 : index
      %c0_18 = arith.constant 0 : index
      %26 = vector.load %arg11[%c0_17, %c0_18] : memref<1x32xf32, #tpu.memory_space<vmem>>, vector<1x32xf32>
      %cst_19 = arith.constant 6.250000e-02 : f32
      %27 = vector.broadcast %cst_19 : f32 to vector<1x32xf32>
      %28 = arith.mulf %26, %27 : vector<1x32xf32>
      %c0_20 = arith.constant 0 : index
      %c0_21 = arith.constant 0 : index
      %29 = vector.load %arg12[%c0_20, %c0_21] : memref<1x32xf32, #tpu.memory_space<vmem>>, vector<1x32xf32>
      %cst_22 = arith.constant 6.250000e-02 : f32
      %30 = vector.broadcast %cst_22 : f32 to vector<1x32xf32>
      %31 = arith.mulf %29, %30 : vector<1x32xf32>
      %32 = arith.mulf %28, %28 : vector<1x32xf32>
      %33 = arith.subf %31, %32 : vector<1x32xf32>
      %cst_23 = arith.constant 0.000000e+00 : f32
      %34 = vector.broadcast %cst_23 : f32 to vector<1x32xf32>
      %35 = arith.maximumf %33, %34 : vector<1x32xf32>
      %cst_24 = arith.constant 9.99999974E-6 : f32
      %36 = vector.broadcast %cst_24 : f32 to vector<1x32xf32>
      %37 = arith.addf %35, %36 : vector<1x32xf32>
      %38 = math.rsqrt %37 : vector<1x32xf32>
      %c0_25 = arith.constant 0 : index
      %c0_26 = arith.constant 0 : index
      %39 = vector.load %arg2[%c0_25, %c0_26] : memref<1x32xf32, #tpu.memory_space<vmem>>, vector<1x32xf32>
      %40 = arith.mulf %38, %39 : vector<1x32xf32>
      %c0_27 = arith.constant 0 : index
      %c0_28 = arith.constant 0 : index
      %41 = vector.load %arg13[%c0_27, %c0_28] : memref<8x32xf32, #tpu.memory_space<vmem>>, vector<8x32xf32>
      %42 = vector.broadcast %28 : vector<1x32xf32> to vector<8x32xf32>
      %43 = arith.subf %41, %42 : vector<8x32xf32>
      %44 = vector.broadcast %40 : vector<1x32xf32> to vector<8x32xf32>
      %45 = arith.mulf %43, %44 : vector<8x32xf32>
      %c0_29 = arith.constant 0 : index
      %c0_30 = arith.constant 0 : index
      %46 = vector.load %arg3[%c0_29, %c0_30] : memref<1x32xf32, #tpu.memory_space<vmem>>, vector<1x32xf32>
      %47 = vector.broadcast %46 : vector<1x32xf32> to vector<8x32xf32>
      %48 = arith.addf %45, %47 : vector<8x32xf32>
      %c0_31 = arith.constant 0 : index
      %c0_32 = arith.constant 0 : index
      %49 = vector.load %arg4[%c0_31, %c0_32] : memref<32x32xf32, #tpu.memory_space<vmem>>, vector<32x32xf32>
      %cst_33 = arith.constant dense<0.000000e+00> : vector<8x32xf32>
      %50 = tpu.matmul %48, %49, %cst_33 {dimension_numbers = #tpu.dot_dimension_numbers<[1], [0], [0], [1], [0, 0, 1, 1], [], []>} : vector<8x32xf32>, vector<32x32xf32>, vector<8x32xf32> -> vector<8x32xf32>
      %c0_34 = arith.constant 0 : index
      %c0_35 = arith.constant 0 : index
      %51 = vector.load %arg5[%c0_34, %c0_35] : memref<1x32xf32, #tpu.memory_space<vmem>>, vector<1x32xf32>
      %52 = vector.broadcast %51 : vector<1x32xf32> to vector<8x32xf32>
      %53 = arith.addf %50, %52 : vector<8x32xf32>
      %54 = tpu.iota {dimensions = array<i32: 0>} : vector<8x1xi32>
      %c2_i32 = arith.constant 2 : i32
      %55 = vector.broadcast %c2_i32 : i32 to vector<8x1xi32>
      %56 = arith.cmpi slt, %54, %55 : vector<8x1xi32>
      %57 = arith.extui %56 : vector<8x1xi1> to vector<8x1xi32>
      %58 = arith.sitofp %57 : vector<8x1xi32> to vector<8x1xf32>
      %59 = vector.broadcast %58 : vector<8x1xf32> to vector<8x32xf32>
      %60 = arith.mulf %53, %59 : vector<8x32xf32>
      %cst_36 = arith.constant dense<0.000000e+00> : vector<32xf32>
      %61 = vector.multi_reduction <add>, %60, %cst_36 [0] : vector<8x32xf32> to vector<32xf32>
      %62 = vector.shape_cast %61 : vector<32xf32> to vector<1x32xf32>
      %cst_37 = arith.constant 5.000000e-01 : f32
      %63 = vector.broadcast %cst_37 : f32 to vector<1x32xf32>
      %64 = arith.mulf %62, %63 : vector<1x32xf32>
      %65 = arith.mulf %60, %60 : vector<8x32xf32>
      %cst_38 = arith.constant dense<0.000000e+00> : vector<32xf32>
      %66 = vector.multi_reduction <add>, %65, %cst_38 [0] : vector<8x32xf32> to vector<32xf32>
      %67 = vector.shape_cast %66 : vector<32xf32> to vector<1x32xf32>
      %cst_39 = arith.constant 5.000000e-01 : f32
      %68 = vector.broadcast %cst_39 : f32 to vector<1x32xf32>
      %69 = arith.mulf %67, %68 : vector<1x32xf32>
      %70 = arith.mulf %64, %64 : vector<1x32xf32>
      %71 = arith.subf %69, %70 : vector<1x32xf32>
      %cst_40 = arith.constant 0.000000e+00 : f32
      %72 = vector.broadcast %cst_40 : f32 to vector<1x32xf32>
      %73 = arith.maximumf %71, %72 : vector<1x32xf32>
      %cst_41 = arith.constant 9.99999974E-6 : f32
      %74 = vector.broadcast %cst_41 : f32 to vector<1x32xf32>
      %75 = arith.addf %73, %74 : vector<1x32xf32>
      %76 = math.rsqrt %75 : vector<1x32xf32>
      %c0_42 = arith.constant 0 : index
      %c0_43 = arith.constant 0 : index
      %77 = vector.load %arg6[%c0_42, %c0_43] : memref<1x32xf32, #tpu.memory_space<vmem>>, vector<1x32xf32>
      %78 = arith.mulf %76, %77 : vector<1x32xf32>
      %79 = vector.broadcast %64 : vector<1x32xf32> to vector<8x32xf32>
      %80 = arith.subf %53, %79 : vector<8x32xf32>
      %81 = vector.broadcast %78 : vector<1x32xf32> to vector<8x32xf32>
      %82 = arith.mulf %80, %81 : vector<8x32xf32>
      %c0_44 = arith.constant 0 : index
      %c0_45 = arith.constant 0 : index
      %83 = vector.load %arg7[%c0_44, %c0_45] : memref<1x32xf32, #tpu.memory_space<vmem>>, vector<1x32xf32>
      %84 = vector.broadcast %83 : vector<1x32xf32> to vector<8x32xf32>
      %85 = arith.addf %82, %84 : vector<8x32xf32>
      %cst_46 = arith.constant 0.000000e+00 : f32
      %86 = vector.broadcast %cst_46 : f32 to vector<8x32xf32>
      %87 = arith.maximumf %85, %86 : vector<8x32xf32>
      %c0_47 = arith.constant 0 : index
      %c0_48 = arith.constant 0 : index
      %88 = vector.load %arg8[%c0_47, %c0_48] : memref<32x128xf32, #tpu.memory_space<vmem>>, vector<32x128xf32>
      %cst_49 = arith.constant dense<0.000000e+00> : vector<8x128xf32>
      %89 = tpu.matmul %87, %88, %cst_49 {dimension_numbers = #tpu.dot_dimension_numbers<[1], [0], [0], [1], [0, 0, 1, 1], [], []>} : vector<8x32xf32>, vector<32x128xf32>, vector<8x128xf32> -> vector<8x128xf32>
      %c0_50 = arith.constant 0 : index
      %c0_51 = arith.constant 0 : index
      %90 = vector.load %arg9[%c0_50, %c0_51] : memref<1x128xf32, #tpu.memory_space<vmem>>, vector<1x128xf32>
      %91 = vector.broadcast %90 : vector<1x128xf32> to vector<8x128xf32>
      %92 = arith.addf %89, %91 : vector<8x128xf32>
      %93 = arith.mulf %92, %92 : vector<8x128xf32>
      %cst_52 = arith.constant dense<0.000000e+00> : vector<8xf32>
      %94 = vector.multi_reduction <add>, %93, %cst_52 [1] : vector<8x128xf32> to vector<8xf32>
      %95 = vector.shape_cast %94 : vector<8xf32> to vector<8x1xf32>
      %cst_53 = arith.constant 1.000000e-24 : f32
      %96 = vector.broadcast %cst_53 : f32 to vector<8x1xf32>
      %97 = arith.maximumf %95, %96 : vector<8x1xf32>
      %98 = math.rsqrt %97 : vector<8x1xf32>
      %99 = vector.broadcast %98 : vector<8x1xf32> to vector<8x128xf32>
      %100 = arith.mulf %92, %99 : vector<8x128xf32>
      %c0_54 = arith.constant 0 : index
      %c0_55 = arith.constant 0 : index
      %101 = vector.load %arg10[%c0_54, %c0_55] : memref<8x128xf32, #tpu.memory_space<vmem>>, vector<8x128xf32>
      tpu.vector_store %arg10[%c0_54, %c0_55], %100 {strides = array<i32>} : memref<8x128xf32, #tpu.memory_space<vmem>>, vector<8x128xf32>,
    } else {
    }
    return
  }
  func.func @transform_0(%arg0: i32) -> (i32, i32, i32) {
    %c0_i32 = arith.constant 0 : i32
    %c0_i32_0 = arith.constant 0 : i32
    %c0_i32_1 = arith.constant 0 : i32
    return %arg0, %c0_i32, %c0_i32_0 : i32, i32, i32
  }
  func.func @transform_1(%arg0: i32) -> (i32, i32) {
    %c0_i32 = arith.constant 0 : i32
    %c0_i32_0 = arith.constant 0 : i32
    %c0_i32_1 = arith.constant 0 : i32
    return %c0_i32, %c0_i32_0 : i32, i32
  }
  func.func @transform_2(%arg0: i32) -> (i32, i32) {
    %c0_i32 = arith.constant 0 : i32
    %c0_i32_0 = arith.constant 0 : i32
    %c0_i32_1 = arith.constant 0 : i32
    return %c0_i32, %c0_i32_0 : i32, i32
  }
  func.func @transform_3(%arg0: i32) -> (i32, i32) {
    %c0_i32 = arith.constant 0 : i32
    %c0_i32_0 = arith.constant 0 : i32
    %c0_i32_1 = arith.constant 0 : i32
    return %c0_i32, %c0_i32_0 : i32, i32
  }
  func.func @transform_4(%arg0: i32) -> (i32, i32) {
    %c0_i32 = arith.constant 0 : i32
    %c0_i32_0 = arith.constant 0 : i32
    %c0_i32_1 = arith.constant 0 : i32
    return %c0_i32, %c0_i32_0 : i32, i32
  }
  func.func @transform_5(%arg0: i32) -> (i32, i32) {
    %c0_i32 = arith.constant 0 : i32
    %c0_i32_0 = arith.constant 0 : i32
    %c0_i32_1 = arith.constant 0 : i32
    return %c0_i32, %c0_i32_0 : i32, i32
  }
  func.func @transform_6(%arg0: i32) -> (i32, i32) {
    %c0_i32 = arith.constant 0 : i32
    %c0_i32_0 = arith.constant 0 : i32
    %c0_i32_1 = arith.constant 0 : i32
    return %c0_i32, %c0_i32_0 : i32, i32
  }
  func.func @transform_7(%arg0: i32) -> (i32, i32) {
    %c0_i32 = arith.constant 0 : i32
    %c0_i32_0 = arith.constant 0 : i32
    %c0_i32_1 = arith.constant 0 : i32
    return %c0_i32, %c0_i32_0 : i32, i32
  }
  func.func @transform_8(%arg0: i32) -> (i32, i32) {
    %c0_i32 = arith.constant 0 : i32
    %c0_i32_0 = arith.constant 0 : i32
    %c0_i32_1 = arith.constant 0 : i32
    return %c0_i32, %c0_i32_0 : i32, i32
  }
  func.func @transform_9(%arg0: i32) -> (i32, i32) {
    %c0_i32 = arith.constant 0 : i32
    %c0_i32_0 = arith.constant 0 : i32
    %c0_i32_1 = arith.constant 0 : i32
    return %c0_i32, %c0_i32_0 : i32, i32
  }
}

</mosaic_0001>

<bundles_post_ra>
// kernel: tpu_custom_call.1
= control target key start
LH: loop header
LB: loop body
LE: loop exit
PB: predicated region body
PF: predicated region fallthrough
CT: control target
= control target key end

     0   :  { %14 = vsyncpa [#allocation6], 0  ;;  %s706_s0 = inlined_call_operand.hbm [shape: f32[8,8,32], index: 0, kind: input, shape index: {}]   ;;  %s707_s1 = inlined_call_operand.hbm [shape: f32[1,32], index: 1, kind: input, shape index: {}]   ;;  %s708_s2 = inlined_call_operand.vmem [shape: f32[1,32], index: 2, kind: input, shape index: {}]   ;;  %s709_s3 = inlined_call_operand.hbm [shape: f32[32,32], index: 3, kind: input, shape index: {}]   ;;  %s710_s4 = inlined_call_operand.vmem [shape: f32[1,32], index: 4, kind: input, shape index: {}]   ;;  %s711_s5 = inlined_call_operand.vmem [shape: f32[1,32], index: 5, kind: input, shape index: {}]   ;;  %s712_s6 = inlined_call_operand.vmem [shape: f32[1,32], index: 6, kind: input, shape index: {}]   ;;  %s713_s7 = inlined_call_operand.hbm [shape: f32[32,128], index: 7, kind: input, shape index: {}]   ;;  %s714_s8 = inlined_call_operand.vmem [shape: f32[1,128], index: 8, kind: input, shape index: {}]   ;;  %s715_s9 = inlined_call_operand.hbm [shape: f32[8,128], index: 9, kind: output, shape index: {}]  }
   0x1   :  { %15 = vsyncpa [#allocation9], 0 }
   0x2   :  { %16 = vsyncpa [#allocation12], 0  ;;  %s36_s11 = sshll.u32 %s707_s1, 4  ;;  %s37_s11 = int_to_ptr.hbm [resolvable:$true] %s36_s11 }
   0x3   :  { %17 = vsyncpa [#allocation7], 0  ;;  %s580_s12 = smov [#allocation8]   ;;  %s22_s16 = sshll.u32 %s706_s0, 4  ;;  %s23_s16 = int_to_ptr.hbm [resolvable:$true] %s22_s16 }
   0x4   :  { %s38_s13 = sshll.u32 %s580_s12, 4  ;;  %s581_s17 = smov [#allocation5]   ;;  %s39_s13 = int_to_ptr.vmem [resolvable:$true] %s38_s13 }
   0x5   :  { %41 = dma.hbm_to_vmem [thread:$0]  %s37_s11, 16, %s39_s13, [#allocation9]  }
   0x6   :  { %s24_s18 = sshll.u32 %s581_s17, 4  ;;  %s582_s19 = smov 128   ;;  %s25_s18 = int_to_ptr.vmem [resolvable:$true] %s24_s18 }
   0x7   :  { %s583_s20 = smov 8   ;;  %s48_s1 = sshll.u32 %s709_s3, 4  ;;  %s49_s1 = int_to_ptr.hbm [resolvable:$true] %s48_s1 }
   0x8   :  { %30 = dma.hbm_to_vmem [thread:$0]  %s23_s16, 1024, %s25_s18, [#allocation6], %s582_s19, %s582_s19, %s583_s20  }
   0x9   :  { %s584_s23 = smov [#allocation10]   ;;  %s67_s0 = sshll.u32 %s713_s7, 4  ;;  %s68_s0 = int_to_ptr.hbm [resolvable:$true] %s67_s0 }
   0xa   :  { %s50_s24 = sshll.u32 %s584_s23, 4  ;;  %s585_s27 = smov [#allocation11]   ;;  %s51_s24 = int_to_ptr.vmem [resolvable:$true] %s50_s24 }
   0xb   :  { %56 = dma.hbm_to_vmem [thread:$0]  %s49_s1, 512, %s51_s24, [#allocation9], %s582_s19, %s582_s19, %s583_s20  }
   0xc   :  { %s69_s28 = sshll.u32 %s585_s27, 4  ;;  %s70_s28 = int_to_ptr.vmem [resolvable:$true] %s69_s28 }
   0xd   :  { %75 = dma.hbm_to_vmem [thread:$0]  %s68_s0, 512, %s70_s28, [#allocation12], %s582_s19, %s582_s19, %s583_s20  }
   0xe   :  { %572 = dma.done.wait [#allocation6], 1024  }
   0xf   :  { %573 = vsyncadd [#allocation6], 4294966272 }
  0x10   :  { %574 = dma.done.wait [#allocation9], 528  }
  0x11   :  { %575 = vsyncadd [#allocation9], 4294966768 }
  0x12   :  { %576 = dma.done.wait [#allocation12], 512  }
  0x13   :  { %577 = vsyncadd [#allocation12], 4294966784  ;;  %vm98_vm0 = vcmask 253952   ;;  %v586_v0 = vmov 0.0   ;;  %vm110_vm1 = vcmask 261120   ;;  %v289_v1 = vld [vmem:[#allocation10 + $0x18] sm:$0xff] }
  0x14   :  { %99 = vst.msk [vmem:[#allocation2] sm:$0x1] %vm98_vm0, %v586_v0  ;;  %v288_v2 = vld [vmem:[#allocation10 + $0x10] sm:$0xff]  ;;  %309 = vmatpush.msra.mxu0 %v289_v1  ;;  %v287_v3 = vld [vmem:[#allocation10 + $0x8] sm:$0xff]  ;;  %v101_v4 = vld [vmem:[#allocation5] sm:$0xff]  ;;  %vm232_vm2 = vcmask 1041409  }
  0x15   :  { %100 = vst.msk [vmem:[#allocation3] sm:$0x1] %vm98_vm0, %v586_v0  ;;  %v102_v5 = vld [vmem:[#allocation5 + $0x8] sm:$0xff]  ;;  %v103_v6 = vld [vmem:[#allocation5 + $0x10] sm:$0xff]  ;;  %v104_v7 = vld [vmem:[#allocation5 + $0x18] sm:$0xff]  ;;  %v111_v9 = vsel %vm110_vm1, %v101_v4, 0.0  ;;  %v136_v11 = vmul.f32 %v101_v4, %v101_v4 }
  0x16   :  { %v105_v8 = vld [vmem:[#allocation5 + $0x20] sm:$0xff]  ;;  %v112_v10 = vsel %vm110_vm1, %v102_v5, 0.0  ;;  %v137_v12 = vmul.f32 %v102_v5, %v102_v5  ;;  %310 = vmatpush.msra.mxu0 %v288_v2  ;;  %v106_v13 = vld [vmem:[#allocation5 + $0x28] sm:$0xff]  ;;  %v107_v14 = vld [vmem:[#allocation5 + $0x30] sm:$0xff]  ;;  %v114_v17 = vsel %vm110_vm1, %v103_v6, 0.0  ;;  %v116_v18 = vsel %vm110_vm1, %v104_v7, 0.0 }
  0x17   :  { %v108_v15 = vld [vmem:[#allocation5 + $0x38] sm:$0xff]  ;;  %v113_v16 = vadd.f32 %v112_v10, %v111_v9  ;;  %v118_v19 = vsel %vm110_vm1, %v105_v8, 0.0  ;;  %v286_v20 = vld [vmem:[#allocation10] sm:$0xff]  ;;  %v120_v21 = vsel %vm110_vm1, %v106_v13, 0.0  ;;  %v661_v22 = vsel %vm110_vm1, %v107_v14, 0.0 }
  0x18   :  { %v664_v23 = vsel %vm110_vm1, %v108_v15, 0.0  ;;  %v138_v24 = vmul.f32 %v103_v6, %v103_v6  ;;  %311 = vmatpush.msra.mxu0 %v287_v3  ;;  %v139_v26 = vmul.f32 %v104_v7, %v104_v7  ;;  %v140_v27 = vmul.f32 %v105_v8, %v105_v8 }
  0x19   :  { %v115_v25 = vadd.f32 %v114_v17, %v113_v16  ;;  %v141_v28 = vmul.f32 %v106_v13, %v106_v13  ;;  %v142_v29 = vmul.f32 %v107_v14, %v107_v14  ;;  %v143_v30 = vmul.f32 %v108_v15, %v108_v15 }
  0x1a   :  { %v144_v31 = vsel %vm110_vm1, %v136_v11, 0.0  ;;  %v145_v32 = vsel %vm110_vm1, %v137_v12, 0.0  ;;  %312 = vmatpush.msra.mxu0 %v286_v20  ;;  %v147_v35 = vsel %vm110_vm1, %v138_v24, 0.0  ;;  %v149_v36 = vsel %vm110_vm1, %v139_v26, 0.0 }
  0x1b   :  { %v117_v33 = vadd.f32 %v116_v18, %v115_v25  ;;  %v146_v34 = vadd.f32 %v145_v32, %v144_v31  ;;  %v151_v37 = vsel %vm110_vm1, %v140_v27, 0.0  ;;  %v153_v38 = vsel %vm110_vm1, %v141_v28, 0.0 }
  0x1c   :  { %v155_v39 = vsel %vm110_vm1, %v142_v29, 0.0  ;;  %v157_v40 = vsel %vm110_vm1, %v143_v30, 0.0  ;;  %v168_v43 = vrot.slane %v111_v9, 4  ;;  %v174_v44 = vrot.slane %v112_v10, 4 }
  0x1d   :  { %v119_v41 = vadd.f32 %v118_v19, %v117_v33  ;;  %v148_v42 = vadd.f32 %v147_v35, %v146_v34  ;;  %v180_v45 = vrot.slane %v114_v17, 4  ;;  %v186_v46 = vrot.slane %v116_v18, 4 }
  0x1e   :  { %v192_v47 = vrot.slane %v118_v19, 4  ;;  %v198_v48 = vrot.slane %v120_v21, 4  ;;  %v169_v51 = vadd.f32 %v168_v43, %v111_v9  ;;  %v175_v52 = vadd.f32 %v174_v44, %v112_v10  ;;  %v109_v43 = vld [vmem:[#allocation2] sm:$0x1] }
  0x1f   :  { %v121_v49 = vadd.f32 %v120_v21, %v119_v41  ;;  %v150_v50 = vadd.f32 %v149_v36, %v148_v42  ;;  %v181_v53 = vadd.f32 %v180_v45, %v114_v17  ;;  %v187_v54 = vadd.f32 %v186_v46, %v116_v18 }
  0x20   :  { %v193_v55 = vadd.f32 %v192_v47, %v118_v19  ;;  %v199_v56 = vadd.f32 %v198_v48, %v120_v21  ;;  %v170_v59 = vrot.slane %v169_v51, 2  ;;  %v176_v60 = vrot.slane %v175_v52, 2 }
  0x21   :  { %v123_v57 = vadd.f32 %v661_v22, %v121_v49  ;;  %v152_v58 = vadd.f32 %v151_v37, %v150_v50  ;;  %v182_v61 = vrot.slane %v181_v53, 2  ;;  %v188_v62 = vrot.slane %v187_v54, 2 }
  0x22   :  { %v194_v63 = vrot.slane %v193_v55, 2  ;;  %v200_v1 = vrot.slane %v199_v56, 2  ;;  %v171_v4 = vadd.f32 %v170_v59, %v169_v51  ;;  %v177_v5 = vadd.f32 %v176_v60, %v175_v52 }
  0x23   :  { %v125_v2 = vadd.f32 %v664_v23, %v123_v57  ;;  %v154_v3 = vadd.f32 %v153_v38, %v152_v58  ;;  %v183_v6 = vadd.f32 %v182_v61, %v181_v53  ;;  %v189_v7 = vadd.f32 %v188_v62, %v187_v54 }
  0x24   :  { %v195_v8 = vadd.f32 %v194_v63, %v193_v55  ;;  %v201_v9 = vadd.f32 %v200_v1, %v199_v56  ;;  %v172_v12 = vrot.slane %v171_v4, 1  ;;  %v178_v13 = vrot.slane %v177_v5, 1  ;;  %v135_v55 = vld [vmem:[#allocation3] sm:$0x1] }
  0x25   :  { %v126_v10 = vrot.slane %v125_v2, 4  ;;  %v156_v11 = vadd.f32 %v155_v39, %v154_v3  ;;  %v184_v14 = vrot.slane %v183_v6, 1  ;;  %v190_v15 = vrot.slane %v189_v7, 1 }
  0x26   :  { %v196_v16 = vrot.slane %v195_v8, 1  ;;  %v173_v19 = vadd.f32 %v172_v12, %v171_v4  ;;  %v179_v20 = vadd.f32 %v178_v13, %v177_v5  ;;  %v202_v24 = vrot.slane %v201_v9, 1 }
  0x27   :  { %v127_v17 = vadd.f32 %v126_v10, %v125_v2  ;;  %v158_v18 = vadd.f32 %v157_v40, %v156_v11  ;;  %v185_v21 = vadd.f32 %v184_v14, %v183_v6  ;;  %v204_v27 = vrot.slane %v661_v22, 4 }
  0x28   :  { %v210_v28 = vrot.slane %v664_v23, 4  ;;  %v191_v29 = vadd.f32 %v190_v15, %v189_v7  ;;  %v197_v30 = vadd.f32 %v196_v16, %v195_v8  ;;  %v216_v31 = vmul.f32 0.125, %v173_v19  ;;  %v270_v19 = vld [vmem:[#allocation8] sm:$0x1] }
  0x29   :  { %v128_v25 = vrot.slane %v127_v17, 2  ;;  %v159_v26 = vrot.slane %v158_v18, 4  ;;  %v217_v32 = vmul.f32 0.125, %v179_v20  ;;  %v205_v35 = vadd.f32 %v204_v27, %v661_v22  ;;  %v442_v27 = vld [vmem:[%s708_s2] ss:$0 sm:$0xff] }
  0x2a   :  { %v211_v36 = vadd.f32 %v210_v28, %v664_v23  ;;  %v203_v37 = vadd.f32 %v202_v24, %v201_v9  ;;  %v218_v38 = vmul.f32 0.125, %v185_v21  ;;  %vm234_vm3 = vcmask 1042434  }
  0x2b   :  { %v129_v33 = vadd.f32 %v128_v25, %v127_v17  ;;  %v160_v34 = vadd.f32 %v159_v26, %v158_v18  ;;  %v206_v41 = vrot.slane %v205_v35, 2  ;;  %v219_v44 = vmul.f32 0.125, %v191_v29 }
  0x2c   :  { %v212_v42 = vrot.slane %v211_v36, 2  ;;  %v220_v45 = vmul.f32 0.125, %v197_v30  ;;  %v233_v46 = vsel %vm232_vm2, %v217_v32, %v216_v31  ;;  %vm236_vm4 = vcmask 1043459   ;;  %v443_v32 = vld [vmem:[%s710_s4] ss:$0 sm:$0xff] }
  0x2d   :  { %v130_v39 = vrot.slane %v129_v33, 1  ;;  %v161_v40 = vrot.slane %v160_v34, 2  ;;  %v207_v49 = vadd.f32 %v206_v41, %v205_v35  ;;  %v221_v22 = vmul.f32 0.125, %v203_v37 }
  0x2e   :  { %v213_v50 = vadd.f32 %v212_v42, %v211_v36  ;;  %v235_v51 = vsel %vm234_vm3, %v218_v38, %v233_v46  ;;  %vm238_vm5 = vcmask 1044484   ;;  %vm240_vm6 = vcmask 1045509  }
  0x2f   :  { %v131_v47 = vadd.f32 %v130_v39, %v129_v33  ;;  %v162_v48 = vadd.f32 %v161_v40, %v160_v34  ;;  %v208_v53 = vrot.slane %v207_v49, 1  ;;  %v237_v56 = vsel %vm236_vm4, %v219_v44, %v235_v51 }
  0x30   :  { %v214_v54 = vrot.slane %v213_v50, 1  ;;  %v239_v60 = vsel %vm238_vm5, %v220_v45, %v237_v56  ;;  %vm242_vm7 = vcmask 1046534   ;;  %vm244_vm8 = vcmask 1047559  }
  0x31   :  { %v132_v23 = vadd.f32 %v131_v47, %v109_v43  ;;  %v163_v52 = vrot.slane %v162_v48, 1  ;;  %v209_v58 = vadd.f32 %v208_v53, %v207_v49  ;;  %v241_v61 = vsel %vm240_vm6, %v221_v22, %v239_v60  ;;  %v368_v22 = vld [vmem:[#allocation11 + $0x18] sm:$0xff] }
  0x32   :  { %v215_v59 = vadd.f32 %v214_v54, %v213_v50  ;;  %v317_v30 = vlaneseq  ;;  %388 = vmatpush.msra.mxu1 %v368_v22 }
  0x33   :  { %134 = vst.msk [vmem:[#allocation2] sm:$0x1] %vm98_vm0, %v132_v23  ;;  %v164_v57 = vadd.f32 %v163_v52, %v162_v48  ;;  %v222_v63 = vmul.f32 0.125, %v209_v58  ;;  %v367_v23 = vld [vmem:[#allocation11 + $0x10] sm:$0xff]  ;;  %v366_v52 = vld [vmem:[#allocation11 + $0x8] sm:$0xff] }
  0x34   :  { %v223_v1 = vmul.f32 0.125, %v215_v59  ;;  %v318_v31 = vshrl.u32 %v317_v30, 7  ;;  %389 = vmatpush.msra.mxu1 %v367_v23 }
  0x35   :  { %v165_v62 = vadd.f32 %v164_v57, %v135_v55  ;;  %v243_v2 = vsel %vm242_vm7, %v222_v63, %v241_v61  ;;  %v365_v55 = vld [vmem:[#allocation11] sm:$0xff] }
  0x36   :  { %v245_v3 = vsel %vm244_vm8, %v223_v1, %v243_v2  ;;  %vm319_vm12 = vcmp.lt.s32.totalorder %v318_v31, 2  ;;  %390 = vmatpush.msra.mxu1 %v366_v52  ;;  %v354_v2 = vld [vmem:[%s711_s5] sm:$0x1]  ;;  %s587_s5 = smov [#allocation13]  }
  0x37   :  { %166 = vst.msk [vmem:[#allocation3] sm:$0x1] %vm98_vm0, %v165_v62  ;;  %v432_v34 = vsel %vm319_vm12, 1.0, %v586_v0 }
  0x38   :  { %248 = vst.msk [vmem:[#allocation4] sm:$0xff] %vm110_vm1, %v245_v3  ;;  %391 = vmatpush.msra.mxu1 %v365_v55 }
  0x3a   :  { %v252_v4 = vld [vmem:[#allocation2] sm:$0x1] }
  0x3b   :  { %v253_v5 = vmul.f32 0.0625, %v252_v4 }
  0x3d   :  { %v256_v6 = vmul.f32 %v253_v5, %v253_v5  ;;  %v274_v17 = vperm.slane %v253_v5, 0 }
  0x3e   :  { %v254_v7 = vld [vmem:[#allocation3] sm:$0x1] }
  0x3f   :  { %v255_v8 = vmul.f32 0.0625, %v254_v7  ;;  %v272_v20 = vld [vmem:[#allocation4] sm:$0xff]  ;;  %v444_v7 = vld [vmem:[%s712_s6] ss:$0 sm:$0xff]  ;;  %s417_s6 = sshll.u32 %s587_s5, 4  ;;  %s418_s6 = int_to_ptr.vmem [resolvable:$true] %s417_s6 }
  0x40   :  { %v276_v25 = vsub.f32 %v272_v20, %v274_v17 }
  0x41   :  { %v257_v9 = vsub.f32 %v255_v8, %v256_v6 }
  0x43   :  { %v258_v10 = vmax.f32 %v257_v9, 0.0 }
  0x45   :  { %v259_v11 = vadd.f32 1e-05, %v258_v10 }
  0x47   :  { %446 = vrsqrt.f32 %v259_v11  ;;  %vm266_vm9 = vweird.f32 %v259_v11 }
  0x4d   :  { %v447_v12 = vpop.eup %446 }
  0x4e   :  { %v261_v13 = vmul.f32 %v447_v12, %v259_v11  ;;  %vm267_vm10 = vweird.f32 %v447_v12  ;;  %v445_v11 = vld [vmem:[%s714_s8] ss:$0 sm:$0xff]  ;;  %s419_s8 = sshll.u32 %s715_s9, 4  ;;  %s420_s8 = int_to_ptr.hbm [resolvable:$true] %s419_s8 }
  0x4f   :  { %vm268_vm11 = vmor %vm266_vm9, %vm267_vm10 }
  0x50   :  { %v262_v14 = vmul.f32 %v447_v12, %v261_v13 }
  0x52   :  { %v263_v15 = vmul.f32 0.5, %v262_v14 }
  0x54   :  { %v264_v16 = vsub.f32 1.5, %v263_v15 }
  0x56   :  { %v265_v18 = vmul.f32 %v447_v12, %v264_v16 }
  0x58   :  { %v269_v21 = vsel %vm268_vm11, %v447_v12, %v265_v18 }
  0x59   :  { %v271_v24 = vmul.f32 %v270_v19, %v269_v21 }
  0x5b   :  { %v278_v26 = vperm.slane %v271_v24, 0 }
  0x5d   :  { %v280_v28 = vmul.f32 %v278_v26, %v276_v25 }
  0x5f   :  { %v285_v29 = vadd.f32 %v442_v27, %v280_v28 }
  0x61   :  { %431 = vmatmul.msk.f32.vlgmr.msra.gmra.mxu0 %vm110_vm1, %v285_v29 }
  0xde   :  { %v314_v33 = vpop.f32.mrf.mxu0 }
  0xdf   :  { %v315_v35 = vadd.f32 %v443_v32, %v314_v33 }
  0xe1   :  { %v322_v36 = vmul.f32 %v432_v34, %v315_v35 }
  0xe3   :  { %v323_v37 = vsel %vm110_vm1, %v322_v36, 0.0  ;;  %v331_v38 = vmul.f32 %v322_v36, %v322_v36 }
  0xe4   :  { %v324_v39 = vrot.slane %v323_v37, 4 }
  0xe5   :  { %v332_v40 = vsel %vm110_vm1, %v331_v38, 0.0 }
  0xe6   :  { %v325_v41 = vadd.f32 %v324_v39, %v323_v37  ;;  %v333_v42 = vrot.slane %v332_v40, 4 }
  0xe8   :  { %v326_v43 = vrot.slane %v325_v41, 2  ;;  %v334_v44 = vadd.f32 %v333_v42, %v332_v40 }
  0xea   :  { %v327_v45 = vadd.f32 %v326_v43, %v325_v41  ;;  %v335_v46 = vrot.slane %v334_v44, 2 }
  0xec   :  { %v328_v47 = vrot.slane %v327_v45, 1  ;;  %v336_v48 = vadd.f32 %v335_v46, %v334_v44 }
  0xee   :  { %v329_v49 = vadd.f32 %v328_v47, %v327_v45  ;;  %v337_v50 = vrot.slane %v336_v48, 1 }
  0xf0   :  { %v330_v0 = vmul.f32 0.5, %v329_v49  ;;  %v338_v51 = vadd.f32 %v337_v50, %v336_v48 }
  0xf2   :  { %v339_v53 = vmul.f32 0.5, %v338_v51  ;;  %v340_v54 = vmul.f32 %v330_v0, %v330_v0  ;;  %v356_v5 = vsub.f32 %v315_v35, %v330_v0 }
  0xf4   :  { %v341_v56 = vsub.f32 %v339_v53, %v340_v54 }
  0xf6   :  { %v342_v57 = vmax.f32 %v341_v56, 0.0 }
  0xf8   :  { %v343_v58 = vadd.f32 1e-05, %v342_v57 }
  0xfa   :  { %448 = vrsqrt.f32 %v343_v58  ;;  %vm350_vm14 = vweird.f32 %v343_v58 }
 0x100   :  { %v449_v59 = vpop.eup %448 }
 0x101   :  { %v345_v60 = vmul.f32 %v449_v59, %v343_v58  ;;  %vm351_vm13 = vweird.f32 %v449_v59 }
 0x102   :  { %vm352_vm15 = vmor %vm350_vm14, %vm351_vm13 }
 0x103   :  { %v346_v61 = vmul.f32 %v449_v59, %v345_v60 }
 0x105   :  { %v347_v62 = vmul.f32 0.5, %v346_v61 }
 0x107   :  { %v348_v63 = vsub.f32 1.5, %v347_v62 }
 0x109   :  { %v349_v1 = vmul.f32 %v449_v59, %v348_v63 }
 0x10b   :  { %v353_v3 = vsel %vm352_vm15, %v449_v59, %v349_v1 }
 0x10c   :  { %v355_v4 = vmul.f32 %v354_v2, %v353_v3 }
 0x10e   :  { %v357_v6 = vperm.slane %v355_v4, 0 }
 0x110   :  { %v358_v8 = vmul.f32 %v357_v6, %v356_v5 }
 0x112   :  { %v363_v9 = vadd.f32 %v444_v7, %v358_v8 }
 0x114   :  { %v364_v10 = vmax.f32 %v363_v9, 0.0 }
 0x116   :  { %433 = vmatmul.msk.f32.vlgmr.msra.gmra.mxu1 %vm110_vm1, %v364_v10 }
 0x193   :  { %v393_v12 = vpop.f32.mrf.mxu1 }
 0x194   :  { %v394_v13 = vadd.f32 %v445_v11, %v393_v12 }
 0x196   :  { %v396_v14 = vmul.f32 %v394_v13, %v394_v13 }
 0x198   :  { %397 = vadd.xlane.f32.xlu0 %v396_v14 }
 0x20b   :  { %v398_v15 = vpop.xlane.xlu0 %397 }
 0x20c   :  { %v399_v16 = vmax.f32 %v398_v15, 1e-24 }
 0x20e   :  { %450 = vrsqrt.f32 %v399_v16  ;;  %vm406_vm2 = vweird.f32 %v399_v16 }
 0x214   :  { %v451_v17 = vpop.eup %450 }
 0x215   :  { %v401_v18 = vmul.f32 %v451_v17, %v399_v16  ;;  %vm407_vm0 = vweird.f32 %v451_v17 }
 0x216   :  { %vm408_vm1 = vmor %vm406_vm2, %vm407_vm0 }
 0x217   :  { %v402_v19 = vmul.f32 %v451_v17, %v401_v18 }
 0x219   :  { %v403_v20 = vmul.f32 0.5, %v402_v19 }
 0x21b   :  { %v404_v21 = vsub.f32 1.5, %v403_v20 }
 0x21d   :  { %v405_v24 = vmul.f32 %v451_v17, %v404_v21 }
 0x21f   :  { %v409_v25 = vsel %vm408_vm1, %v451_v17, %v405_v24 }
 0x220   :  { %v410_v26 = vmul.f32 %v409_v25, %v394_v13 }
 0x222   :  { %411 = vst [vmem:[#allocation13] sm:$0xff] %v410_v26 }
 0x223   :  { %422 = dma.vmem_to_hbm [thread:$0]  %s418_s6, 128, %s420_s8, [#allocation7]  }
 0x224   :  { %578 = dma.done.wait [#allocation7], 128  }
 0x225   :  { %579 = vsyncadd [#allocation7], 4294967168 }
 0x226   :  { %427 = vsyncpa [#allocation6], 1 }
 0x227   :  { %428 = vsyncpa [#allocation9], 1 }
 0x228   :  { %429 = vsyncpa [#allocation12], 1 }
 0x229   :  { %430 = vsyncpa [#allocation7], 1 }

</bundles_post_ra>
